<compile_context>
chip_gen: v6e
topology: v6e:2x2x1
jax: 0.10.0
libtpu: 0.0.40
codegen_flags: <defaults>
</compile_context>

<pallas_src>
import jax
import jax.numpy as jnp
from jax.experimental import pallas as pl
from jax.experimental.pallas import tpu as pltpu


def mlp_kernel(xt_ref, w1b1_ref, w2b2_ref, o_ref):
    xt = xt_ref[...]            # (n_feat, N)        batch on the lane axis
    w1b1 = w1b1_ref[...]        # (n_hid, n_feat+1)  torch (out, in) layout | bias col
    w2b2 = w2b2_ref[...]        # (n_out, n_hid+1)
    n_feat = xt.shape[0]
    n_hid = w1b1.shape[0]

    # hidden^T = relu(W1 @ x^T + b1): unrolled VPU broadcast-FMAs (no MXU).
    # Accumulator starts from the bias column, which broadcasts along lanes.
    h = w1b1[:, n_feat:n_feat + 1]                    # (n_hid, 1)
    for k in range(n_feat):
        h = h + w1b1[:, k:k + 1] * xt[k:k + 1, :]     # -> (n_hid, N)
    h = jnp.maximum(h, 0.0)

    # out^T = W2 @ hidden^T + b2
    out = w2b2[:, n_hid:n_hid + 1]                    # (n_out, 1)
    for j in range(n_hid):
        out = out + w2b2[:, j:j + 1] * h[j:j + 1, :]  # -> (n_out, N)
    o_ref[...] = out                                  # lane-dense stores, f32


@jax.jit
def net_forward(x, w1b1, w2b2):
    """Pallas forward of Net: relu(x @ W1^T + b1) @ W2^T + b2.

    x:    (N, n_feat)          float32
    w1b1: (n_hid, n_feat + 1)  float32  -- torch W1 with b1 as trailing column
    w2b2: (n_out, n_hid + 1)   float32  -- torch W2 with b2 as trailing column
    """
    N, _n_feat = x.shape
    n_out = w2b2.shape[0]

    vmem = pl.BlockSpec(memory_space=pltpu.MemorySpace.VMEM)
    out_t = pl.pallas_call(
        mlp_kernel,
        out_shape=jax.ShapeDtypeStruct((n_out, N), x.dtype),
        in_specs=[vmem, vmem, vmem],
        out_specs=vmem,
    )(x.T, w1b1, w2b2)

    return out_t.T                                    # (N, n_out)


def init_params(key, n_feat, n_hid, n_out):
    """Deterministic init mimicking torch.nn.Linear default U(-1/sqrt(in), 1/sqrt(in))."""
    k1, k2, k3, k4 = jax.random.split(key, 4)
    lim1 = 1.0 / jnp.sqrt(jnp.float32(n_feat))
    lim2 = 1.0 / jnp.sqrt(jnp.float32(n_hid))
    w1 = jax.random.uniform(k1, (n_hid, n_feat), jnp.float32, -lim1, lim1)
    b1 = jax.random.uniform(k2, (n_hid,), jnp.float32, -lim1, lim1)
    w2 = jax.random.uniform(k3, (n_out, n_hid), jnp.float32, -lim2, lim2)
    b2 = jax.random.uniform(k4, (n_out,), jnp.float32, -lim2, lim2)
    return w1, b1, w2, b2


def pack_params(w1, b1, w2, b2):
    """One-time packing: fold each bias into its weight slab as a trailing column."""
    w1b1 = jnp.concatenate([w1, b1[:, None]], axis=1)   # (n_hid, n_feat + 1)
    w2b2 = jnp.concatenate([w2, b2[:, None]], axis=1)   # (n_out, n_hid + 1)
    return w1b1, w2b2


if __name__ == "__main__":
    # Matches fenlei.py: 2 input features, 10 hidden units, 2 output classes,
    # 200 samples (two 100-sample gaussian blobs concatenated).
    N, n_feat, n_hid, n_out = 200, 2, 10, 2

    key = jax.random.PRNGKey(0)
    kx0, kx1, kp = jax.random.split(key, 3)

    # x0 ~ N(+2, 1), x1 ~ N(-2, 1), concatenated along batch (like torch.normal + cat).
    x0 = 2.0 + jax.random.normal(kx0, (N // 2, n_feat), jnp.float32)
    x1 = -2.0 + jax.random.normal(kx1, (N // 2, n_feat), jnp.float32)
    x = jnp.concatenate([x0, x1], axis=0)

    w1, b1, w2, b2 = init_params(kp, n_feat, n_hid, n_out)
    w1b1, w2b2 = pack_params(w1, b1, w2, b2)            # packed once, not per call

    out = net_forward(x, w1b1, w2b2)
    out = jax.block_until_ready(out)

    # Sanity-check against a plain-JAX reference of the same forward pass.
    ref = jnp.maximum(x @ w1.T + b1, 0.0) @ w2.T + b2
    assert out.shape == (N, n_out)
    assert jnp.allclose(out, ref, atol=1e-4, rtol=1e-5)

    print("KERNEL_OK")
</pallas_src>

<mosaic_0001>
module attributes {stable_mosaic.version = 11 : i64} {
  func.func @mlp_kernel(%arg0: memref<2x200xf32, #tpu.memory_space<vmem>>, %arg1: memref<10x3xf32, #tpu.memory_space<vmem>>, %arg2: memref<2x11xf32, #tpu.memory_space<vmem>>, %arg3: memref<2x200xf32, #tpu.memory_space<vmem>>) attributes {dimension_semantics = [], scalar_prefetch = 0 : i64, scratch_operands = 0 : i64, tpu.core_type = #tpu.core_type<tc>} {
    %c0 = arith.constant 0 : index
    %c0_0 = arith.constant 0 : index
    %0 = vector.load %arg0[%c0, %c0_0] : memref<2x200xf32, #tpu.memory_space<vmem>>, vector<2x200xf32>
    %c0_1 = arith.constant 0 : index
    %c0_2 = arith.constant 0 : index
    %1 = vector.load %arg1[%c0_1, %c0_2] : memref<10x3xf32, #tpu.memory_space<vmem>>, vector<10x3xf32>
    %c0_3 = arith.constant 0 : index
    %c0_4 = arith.constant 0 : index
    %2 = vector.load %arg2[%c0_3, %c0_4] : memref<2x11xf32, #tpu.memory_space<vmem>>, vector<2x11xf32>
    %3 = vector.extract_strided_slice %1 {offsets = [0, 2], sizes = [10, 1], strides = [1, 1]} : vector<10x3xf32> to vector<10x1xf32>
    %4 = vector.extract_strided_slice %1 {offsets = [0, 0], sizes = [10, 1], strides = [1, 1]} : vector<10x3xf32> to vector<10x1xf32>
    %5 = vector.extract_strided_slice %0 {offsets = [0, 0], sizes = [1, 200], strides = [1, 1]} : vector<2x200xf32> to vector<1x200xf32>
    %6 = vector.broadcast %4 : vector<10x1xf32> to vector<10x200xf32>
    %7 = vector.broadcast %5 : vector<1x200xf32> to vector<10x200xf32>
    %8 = arith.mulf %6, %7 : vector<10x200xf32>
    %9 = vector.broadcast %3 : vector<10x1xf32> to vector<10x200xf32>
    %10 = arith.addf %9, %8 : vector<10x200xf32>
    %11 = vector.extract_strided_slice %1 {offsets = [0, 1], sizes = [10, 1], strides = [1, 1]} : vector<10x3xf32> to vector<10x1xf32>
    %12 = vector.extract_strided_slice %0 {offsets = [1, 0], sizes = [1, 200], strides = [1, 1]} : vector<2x200xf32> to vector<1x200xf32>
    %13 = vector.broadcast %11 : vector<10x1xf32> to vector<10x200xf32>
    %14 = vector.broadcast %12 : vector<1x200xf32> to vector<10x200xf32>
    %15 = arith.mulf %13, %14 : vector<10x200xf32>
    %16 = arith.addf %10, %15 : vector<10x200xf32>
    %cst = arith.constant 0.000000e+00 : f32
    %17 = vector.broadcast %cst : f32 to vector<10x200xf32>
    %18 = arith.maximumf %16, %17 : vector<10x200xf32>
    %19 = vector.extract_strided_slice %2 {offsets = [0, 10], sizes = [2, 1], strides = [1, 1]} : vector<2x11xf32> to vector<2x1xf32>
    %20 = vector.extract_strided_slice %2 {offsets = [0, 0], sizes = [2, 1], strides = [1, 1]} : vector<2x11xf32> to vector<2x1xf32>
    %21 = vector.extract_strided_slice %18 {offsets = [0, 0], sizes = [1, 200], strides = [1, 1]} : vector<10x200xf32> to vector<1x200xf32>
    %22 = vector.broadcast %20 : vector<2x1xf32> to vector<2x200xf32>
    %23 = vector.broadcast %21 : vector<1x200xf32> to vector<2x200xf32>
    %24 = arith.mulf %22, %23 : vector<2x200xf32>
    %25 = vector.broadcast %19 : vector<2x1xf32> to vector<2x200xf32>
    %26 = arith.addf %25, %24 : vector<2x200xf32>
    %27 = vector.extract_strided_slice %2 {offsets = [0, 1], sizes = [2, 1], strides = [1, 1]} : vector<2x11xf32> to vector<2x1xf32>
    %28 = vector.extract_strided_slice %18 {offsets = [1, 0], sizes = [1, 200], strides = [1, 1]} : vector<10x200xf32> to vector<1x200xf32>
    %29 = vector.broadcast %27 : vector<2x1xf32> to vector<2x200xf32>
    %30 = vector.broadcast %28 : vector<1x200xf32> to vector<2x200xf32>
    %31 = arith.mulf %29, %30 : vector<2x200xf32>
    %32 = arith.addf %26, %31 : vector<2x200xf32>
    %33 = vector.extract_strided_slice %2 {offsets = [0, 2], sizes = [2, 1], strides = [1, 1]} : vector<2x11xf32> to vector<2x1xf32>
    %34 = vector.extract_strided_slice %18 {offsets = [2, 0], sizes = [1, 200], strides = [1, 1]} : vector<10x200xf32> to vector<1x200xf32>
    %35 = vector.broadcast %33 : vector<2x1xf32> to vector<2x200xf32>
    %36 = vector.broadcast %34 : vector<1x200xf32> to vector<2x200xf32>
    %37 = arith.mulf %35, %36 : vector<2x200xf32>
    %38 = arith.addf %32, %37 : vector<2x200xf32>
    %39 = vector.extract_strided_slice %2 {offsets = [0, 3], sizes = [2, 1], strides = [1, 1]} : vector<2x11xf32> to vector<2x1xf32>
    %40 = vector.extract_strided_slice %18 {offsets = [3, 0], sizes = [1, 200], strides = [1, 1]} : vector<10x200xf32> to vector<1x200xf32>
    %41 = vector.broadcast %39 : vector<2x1xf32> to vector<2x200xf32>
    %42 = vector.broadcast %40 : vector<1x200xf32> to vector<2x200xf32>
    %43 = arith.mulf %41, %42 : vector<2x200xf32>
    %44 = arith.addf %38, %43 : vector<2x200xf32>
    %45 = vector.extract_strided_slice %2 {offsets = [0, 4], sizes = [2, 1], strides = [1, 1]} : vector<2x11xf32> to vector<2x1xf32>
    %46 = vector.extract_strided_slice %18 {offsets = [4, 0], sizes = [1, 200], strides = [1, 1]} : vector<10x200xf32> to vector<1x200xf32>
    %47 = vector.broadcast %45 : vector<2x1xf32> to vector<2x200xf32>
    %48 = vector.broadcast %46 : vector<1x200xf32> to vector<2x200xf32>
    %49 = arith.mulf %47, %48 : vector<2x200xf32>
    %50 = arith.addf %44, %49 : vector<2x200xf32>
    %51 = vector.extract_strided_slice %2 {offsets = [0, 5], sizes = [2, 1], strides = [1, 1]} : vector<2x11xf32> to vector<2x1xf32>
    %52 = vector.extract_strided_slice %18 {offsets = [5, 0], sizes = [1, 200], strides = [1, 1]} : vector<10x200xf32> to vector<1x200xf32>
    %53 = vector.broadcast %51 : vector<2x1xf32> to vector<2x200xf32>
    %54 = vector.broadcast %52 : vector<1x200xf32> to vector<2x200xf32>
    %55 = arith.mulf %53, %54 : vector<2x200xf32>
    %56 = arith.addf %50, %55 : vector<2x200xf32>
    %57 = vector.extract_strided_slice %2 {offsets = [0, 6], sizes = [2, 1], strides = [1, 1]} : vector<2x11xf32> to vector<2x1xf32>
    %58 = vector.extract_strided_slice %18 {offsets = [6, 0], sizes = [1, 200], strides = [1, 1]} : vector<10x200xf32> to vector<1x200xf32>
    %59 = vector.broadcast %57 : vector<2x1xf32> to vector<2x200xf32>
    %60 = vector.broadcast %58 : vector<1x200xf32> to vector<2x200xf32>
    %61 = arith.mulf %59, %60 : vector<2x200xf32>
    %62 = arith.addf %56, %61 : vector<2x200xf32>
    %63 = vector.extract_strided_slice %2 {offsets = [0, 7], sizes = [2, 1], strides = [1, 1]} : vector<2x11xf32> to vector<2x1xf32>
    %64 = vector.extract_strided_slice %18 {offsets = [7, 0], sizes = [1, 200], strides = [1, 1]} : vector<10x200xf32> to vector<1x200xf32>
    %65 = vector.broadcast %63 : vector<2x1xf32> to vector<2x200xf32>
    %66 = vector.broadcast %64 : vector<1x200xf32> to vector<2x200xf32>
    %67 = arith.mulf %65, %66 : vector<2x200xf32>
    %68 = arith.addf %62, %67 : vector<2x200xf32>
    %69 = vector.extract_strided_slice %2 {offsets = [0, 8], sizes = [2, 1], strides = [1, 1]} : vector<2x11xf32> to vector<2x1xf32>
    %70 = vector.extract_strided_slice %18 {offsets = [8, 0], sizes = [1, 200], strides = [1, 1]} : vector<10x200xf32> to vector<1x200xf32>
    %71 = vector.broadcast %69 : vector<2x1xf32> to vector<2x200xf32>
    %72 = vector.broadcast %70 : vector<1x200xf32> to vector<2x200xf32>
    %73 = arith.mulf %71, %72 : vector<2x200xf32>
    %74 = arith.addf %68, %73 : vector<2x200xf32>
    %75 = vector.extract_strided_slice %2 {offsets = [0, 9], sizes = [2, 1], strides = [1, 1]} : vector<2x11xf32> to vector<2x1xf32>
    %76 = vector.extract_strided_slice %18 {offsets = [9, 0], sizes = [1, 200], strides = [1, 1]} : vector<10x200xf32> to vector<1x200xf32>
    %77 = vector.broadcast %75 : vector<2x1xf32> to vector<2x200xf32>
    %78 = vector.broadcast %76 : vector<1x200xf32> to vector<2x200xf32>
    %79 = arith.mulf %77, %78 : vector<2x200xf32>
    %80 = arith.addf %74, %79 : vector<2x200xf32>
    %c0_5 = arith.constant 0 : index
    %c0_6 = arith.constant 0 : index
    %81 = vector.load %arg3[%c0_5, %c0_6] : memref<2x200xf32, #tpu.memory_space<vmem>>, vector<2x200xf32>
    tpu.vector_store %arg3[%c0_5, %c0_6], %80 {strides = array<i32>} : memref<2x200xf32, #tpu.memory_space<vmem>>, vector<2x200xf32>,
    return
  }
}

</mosaic_0001>

<bundles_post_ra>
// kernel: net_forward.1
= control target key start
LH: loop header
LB: loop body
LE: loop exit
PB: predicated region body
PF: predicated region fallthrough
CT: control target
= control target key end

     0   :  { %v349_v1 = vmov 1   ;;  %v350_v2 = vmov 0   ;;  %s446_s0 = inlined_call_operand.vmem [shape: f32[2,200], index: 0, kind: input, shape index: {}]   ;;  %s447_s1 = inlined_call_operand.vmem [shape: f32[10,3], index: 1, kind: input, shape index: {}]   ;;  %s448_s2 = inlined_call_operand.vmem [shape: f32[2,11], index: 2, kind: input, shape index: {}]   ;;  %s449_s3 = inlined_call_operand.hbm [shape: f32[2,200], index: 3, kind: output, shape index: {}]  }
   0x1   :  { %v16_v0 = vld [vmem:[%s447_s1] sm:$0xff]  ;;  %311 = vset.pattern.permute.xlu1 %v349_v1  ;;  %309 = vset.pattern.permute.xlu0 %v350_v2 }
   0x2   :  { %65 = vperm.xlu1 %311, %v16_v0   ;;  %21 = vperm.xlu0 %309, %v16_v0  }
   0x3   :  { %8 = vsyncpa [#allocation3], 0  ;;  %v18_v3 = vld [vmem:[%s448_s2] sm:$0x3]  ;;  %v351_v4 = vmov 2   ;;  %v352_v5 = vmov 10   ;;  %v30_v14 = vlaneseq }
   0x4   :  { %v353_v6 = vmov 3   ;;  %v17_v7 = vld [vmem:[%s447_s1 + $0x8] sm:$0x3]  ;;  %v354_v8 = vmov 4   ;;  %v355_v9 = vmov 7   ;;  %v356_v10 = vmov 9  }
   0x5   :  { %v357_v11 = vmov 5   ;;  %v358_v12 = vmov 6   ;;  %v359_v13 = vmov 8   ;;  %v391_v15 = vshrl.u32 %v30_v14, 7  ;;  %v15_v18 = vld [vmem:[%s446_s0] sm:$0xf] }
   0x6   :  { %312 = vset.pattern.permute.xlu1 %v350_v2  ;;  %310 = vset.pattern.permute.xlu0 %v351_v4  ;;  %vm278_vm0 = vcmask 1041408   ;;  %vm279_vm1 = vcmask 584706   ;;  %s361_s0 = smov [#allocation2]  }
   0x7   :  { %104 = vperm.xlu1 %312, %v18_v3   ;;  %53 = vperm.xlu0 %310, %v16_v0   ;;  %v394_v16 = vsub.s32 0, %v391_v15  ;;  %v36_v17 = vsub.s32 2, %v391_v15  ;;  %v401_v19 = vsub.s32 1, %v391_v15  ;;  %v78_v20 = vsub.s32 3, %v391_v15  ;;  %s288_s18 = sshll.u32 %s361_s0, 4  ;;  %vm280_vm2 = vmor %vm279_vm1, %vm278_vm0  ;;  %s289_s18 = int_to_ptr.vmem [resolvable:$true] %s288_s18 }
   0x8   :  { %s327_s19 = scalar_lea.vmem %s289_s18, 64  ;;  %p332_p1 = scmp.lt.s32.totalorder %s289_s18, %s289_s18 }
   0x9   :  { %v33_v21 = vrot.slane %v15_v18, %v394_v16  ;;  %v37_v22 = vrot.slane %v15_v18, %v36_v17  ;;  %v75_v23 = vrot.slane %v15_v18, %v401_v19  ;;  %v79_v24 = vrot.slane %v15_v18, %v78_v20  ;;  %p328_p0 = scmp.ne.s32.totalorder %s289_s18, %s327_s19  ;;  %p333_p2 = scmp.lt.s32.totalorder %s327_s19, %s327_s19 }
   0xb   :  { %313 = vset.pattern.permute.xlu1 %v352_v5  ;;  %314 = vset.pattern.permute.xlu0 %v349_v1  ;;  %v43_v25 = vrot.slane %v33_v21, %v394_v16  ;;  %v47_v26 = vrot.slane %v37_v22, %v394_v16  ;;  %v85_v29 = vrot.slane %v75_v23, %v401_v19  ;;  %p334_p3 = por %p333_p2, %p332_p1 }
   0xc   :  { %118 = vperm.xlu1 %313, %v18_v3   ;;  %124 = vperm.xlu0 %314, %v18_v3   ;;  %v89_v30 = vrot.slane %v79_v24, %v401_v19 }
   0xd   :  { %p335_p4 = pnand %p334_p3, %p328_p0 }
  0x10   :  { %315 = vset.pattern.permute.xlu1 %v351_v4  ;;  %317 = vset.pattern.permute.xlu0 %v353_v6 }
  0x11   :  { %140 = vperm.xlu1 %315, %v18_v3   ;;  %156 = vperm.xlu0 %317, %v18_v3  }
  0x15   :  { %316 = vset.pattern.permute.xlu1 %v350_v2  ;;  %320 = vset.pattern.permute.xlu0 %v354_v8 }
  0x16   :  { %26 = vperm.xlu1 %316, %v17_v7   ;;  %172 = vperm.xlu0 %320, %v18_v3  }
  0x1a   :  { %318 = vset.pattern.permute.xlu1 %v351_v4  ;;  %323 = vset.pattern.permute.xlu0 %v355_v9  ;;  %v209_v4 = vsub.s32 6, %v391_v15 }
  0x1b   :  { %57 = vperm.xlu1 %318, %v17_v7   ;;  %220 = vperm.xlu0 %323, %v18_v3  }
  0x1f   :  { %319 = vset.pattern.permute.xlu1 %v349_v1  ;;  %326 = vset.pattern.permute.xlu0 %v356_v10  ;;  %v177_v1 = vsub.s32 4, %v391_v15 }
  0x20   :  { %69 = vperm.xlu1 %319, %v17_v7  }
  0x24   :  { %321 = vset.pattern.permute.xlu1 %v357_v11 }
  0x25   :  { %188 = vperm.xlu1 %321, %v18_v3  }
  0x29   :  { %322 = vset.pattern.permute.xlu1 %v358_v12 }
  0x2a   :  { %204 = vperm.xlu1 %322, %v18_v3  }
  0x2e   :  { %324 = vset.pattern.permute.xlu1 %v359_v13 }
  0x2f   :  { %236 = vperm.xlu1 %324, %v18_v3  }
  0x33   :  { %325 = vset.pattern.permute.xlu1 %v356_v10 }
  0x34   :  { %252 = vperm.xlu1 %325, %v18_v3   ;;  %v193_v3 = vsub.s32 5, %v391_v15 }
  0x7d   :  { %v66_v27 = vpop.permute.xlu1 %65  ;;  %v22_v28 = vpop.permute.xlu0 %21 }
  0x7e   :  { %v48_v31 = vmul.f32 %v43_v25, %v22_v28  ;;  %v49_v32 = vmul.f32 %v47_v26, %v22_v28  ;;  %v90_v35 = vmul.f32 %v85_v29, %v66_v27  ;;  %v91_v36 = vmul.f32 %v89_v30, %v66_v27 }
  0x82   :  { %v105_v33 = vpop.permute.xlu1 %104  ;;  %v54_v34 = vpop.permute.xlu0 %53 }
  0x83   :  { %v60_v37 = vadd.f32 %v54_v34, %v48_v31  ;;  %v61_v38 = vadd.f32 %v54_v34, %v49_v32  ;;  %v225_v34 = vsub.s32 7, %v391_v15 }
  0x85   :  { %v94_v39 = vadd.f32 %v90_v35, %v60_v37  ;;  %v95_v40 = vadd.f32 %v91_v36, %v61_v38 }
  0x87   :  { %v119_v41 = vpop.permute.xlu1 %118  ;;  %v410_v42 = vmax.f32 %v94_v39, 0.0  ;;  %v412_v43 = vmax.f32 %v95_v40, 0.0  ;;  %v125_v49 = vpop.permute.xlu0 %124 }
  0x89   :  { %v110_v44 = vrot.slane %v410_v42, %v394_v16  ;;  %v114_v45 = vrot.slane %v412_v43, %v394_v16  ;;  %v130_v51 = vrot.slane %v410_v42, %v401_v19  ;;  %v134_v52 = vrot.slane %v412_v43, %v401_v19 }
  0x8a   :  { %v146_v61 = vrot.slane %v410_v42, %v36_v17  ;;  %v150_v62 = vrot.slane %v412_v43, %v36_v17  ;;  %v162_v7 = vrot.slane %v410_v42, %v78_v20  ;;  %v166_v8 = vrot.slane %v412_v43, %v78_v20 }
  0x8b   :  { %v115_v47 = vmul.f32 %v110_v44, %v105_v33  ;;  %v116_v48 = vmul.f32 %v114_v45, %v105_v33  ;;  %v135_v55 = vmul.f32 %v130_v51, %v125_v49  ;;  %v136_v56 = vmul.f32 %v134_v52, %v125_v49 }
  0x8c   :  { %v141_v46 = vpop.permute.xlu1 %140  ;;  %v157_v58 = vpop.permute.xlu0 %156  ;;  %v178_v18 = vrot.slane %v410_v42, %v177_v1  ;;  %v182_v21 = vrot.slane %v412_v43, %v177_v1  ;;  %v194_v24 = vrot.slane %v410_v42, %v193_v3  ;;  %v198_v27 = vrot.slane %v412_v43, %v193_v3 }
  0x8d   :  { %v121_v53 = vadd.f32 %v119_v41, %v115_v47  ;;  %v122_v54 = vadd.f32 %v119_v41, %v116_v48  ;;  %v151_v63 = vmul.f32 %v146_v61, %v141_v46  ;;  %v152_v0 = vmul.f32 %v150_v62, %v141_v46 }
  0x8e   :  { %v167_v14 = vmul.f32 %v162_v7, %v157_v58  ;;  %v168_v17 = vmul.f32 %v166_v8, %v157_v58  ;;  %v210_v37 = vrot.slane %v410_v42, %v209_v4  ;;  %v214_v38 = vrot.slane %v412_v43, %v209_v4 }
  0x8f   :  { %v137_v59 = vadd.f32 %v135_v55, %v121_v53  ;;  %v138_v60 = vadd.f32 %v136_v56, %v122_v54  ;;  %v226_v49 = vrot.slane %v410_v42, %v225_v34  ;;  %v360_v53 = vmov 1983009808  }
  0x90   :  { %v271_v54 = vunpack.c.l.s4 %v360_v53 }
  0x91   :  { %v27_v50 = vpop.permute.xlu1 %26  ;;  %v153_v5 = vadd.f32 %v151_v63, %v137_v59  ;;  %v154_v6 = vadd.f32 %v152_v0, %v138_v60  ;;  %v173_v11 = vpop.permute.xlu0 %172 }
  0x92   :  { %v50_v9 = vmul.f32 %v43_v25, %v27_v50  ;;  %v51_v10 = vmul.f32 %v47_v26, %v27_v50  ;;  %v183_v20 = vmul.f32 %v178_v18, %v173_v11  ;;  %v184_v25 = vmul.f32 %v182_v21, %v173_v11 }
  0x93   :  { %v169_v28 = vadd.f32 %v167_v14, %v153_v5  ;;  %v170_v31 = vadd.f32 %v168_v17, %v154_v6  ;;  %v230_v50 = vrot.slane %v412_v43, %v225_v34  ;;  %v272_v43 = vunpack.c.0.s8 %v271_v54 }
  0x95   :  { %v185_v35 = vadd.f32 %v183_v20, %v169_v28  ;;  %v186_v36 = vadd.f32 %v184_v25, %v170_v31  ;;  %v275_v8 = vsub.s32 %v272_v43, %v391_v15 }
  0x96   :  { %v58_v57 = vpop.permute.xlu1 %57  ;;  %v221_v48 = vpop.permute.xlu0 %220 }
  0x97   :  { %v62_v22 = vadd.f32 %v58_v57, %v50_v9  ;;  %v63_v23 = vadd.f32 %v58_v57, %v51_v10  ;;  %v231_v55 = vmul.f32 %v226_v49, %v221_v48  ;;  %v232_v56 = vmul.f32 %v230_v50, %v221_v48 }
  0x9b   :  { %v70_v2 = vpop.permute.xlu1 %69 }
  0x9c   :  { %v92_v12 = vmul.f32 %v85_v29, %v70_v2  ;;  %v93_v13 = vmul.f32 %v89_v30, %v70_v2 }
  0x9e   :  { %v96_v32 = vadd.f32 %v92_v12, %v62_v22  ;;  %v97_v29 = vadd.f32 %v93_v13, %v63_v23 }
  0xa0   :  { %v189_v26 = vpop.permute.xlu1 %188  ;;  %v100_v39 = vmax.f32 %v96_v32, 0.0  ;;  %v101_v40 = vmax.f32 %v97_v29, 0.0 }
  0xa1   :  { %v199_v30 = vmul.f32 %v194_v24, %v189_v26  ;;  %v200_v33 = vmul.f32 %v198_v27, %v189_v26 }
  0xa2   :  { %v242_v58 = vrot.slane %v100_v39, %v394_v16  ;;  %v246_v59 = vrot.slane %v101_v40, %v394_v16  ;;  %v258_v0 = vrot.slane %v100_v39, %v401_v19  ;;  %v262_v42 = vrot.slane %v101_v40, %v401_v19 }
  0xa3   :  { %v201_v44 = vadd.f32 %v199_v30, %v185_v35  ;;  %v202_v45 = vadd.f32 %v200_v33, %v186_v36 }
  0xa5   :  { %v205_v41 = vpop.permute.xlu1 %204 }
  0xa6   :  { %v215_v46 = vmul.f32 %v210_v37, %v205_v41  ;;  %v216_v47 = vmul.f32 %v214_v38, %v205_v41 }
  0xa8   :  { %v217_v51 = vadd.f32 %v215_v46, %v201_v44  ;;  %v218_v52 = vadd.f32 %v216_v47, %v202_v45 }
  0xaa   :  { %v237_v57 = vpop.permute.xlu1 %236  ;;  %v233_v60 = vadd.f32 %v231_v55, %v217_v51  ;;  %v234_v61 = vadd.f32 %v232_v56, %v218_v52 }
  0xab   :  { %v247_v62 = vmul.f32 %v242_v58, %v237_v57  ;;  %v248_v63 = vmul.f32 %v246_v59, %v237_v57 }
  0xad   :  { %v249_v2 = vadd.f32 %v247_v62, %v233_v60  ;;  %v250_v3 = vadd.f32 %v248_v63, %v234_v61 }
  0xaf   :  { %v253_v1 = vpop.permute.xlu1 %252 }
  0xb0   :  { %v263_v4 = vmul.f32 %v258_v0, %v253_v1  ;;  %v264_v5 = vmul.f32 %v262_v42, %v253_v1 }
  0xb2   :  { %v265_v6 = vadd.f32 %v263_v4, %v249_v2  ;;  %v266_v7 = vadd.f32 %v264_v5, %v250_v3 }
  0xb4   :  { %v269_v16 = vcombine.low %v265_v6, %v266_v7 }
  0xb6   :  { %v276_v9 = vrot.slane %v269_v16, %v275_v8 }
  0xb8   :  { %281 = vst.msk [vmem:[#allocation2] sm:$0xf] %vm280_vm2, %v276_v9 }
  0xb9   :  { %338 = shalt.err (!%p335_p4)
}
  0xba   :  { %291 = dma.vmem_to_hbm [thread:$0]  %s289_s18, 64, %s449_s3, [#allocation3]  }
  0xbb   :  { %347 = dma.done.wait [#allocation3], 64  }
  0xbc   :  { %348 = vsyncadd [#allocation3], 4294967232 }
  0xbd   :  { %295 = vsyncpa [#allocation3], 1 }

</bundles_post_ra>
